<compile_context>
chip_gen: v5e
topology: v5e:2x2
jax: 0.10.0
libtpu: 0.0.40
codegen_flags: <defaults>
</compile_context>

<pallas_src>
import functools

import jax
import jax.numpy as jnp
from jax.experimental import pallas as pl
from jax.experimental.pallas import tpu as pltpu


def _round_up(x, m):
    return ((x + m - 1) // m) * m


def _largest_divisor_le(n, cap):
    for d in range(min(n, cap), 0, -1):
        if n % d == 0:
            return d
    return 1


def fused_kernel(x_ref, w_ref, b_ref, o_ref, *, c_half, b_tile):
    # x_ref : (b_tile, Cin, TP)   pixels on the lane axis
    # w_ref : (Cout, Cin)         fused weight (grid-constant block)
    # b_ref : (Cout, 1)           fused bias, f32
    # o_ref : (b_tile, c_half, TP) lane-dense output
    w = w_ref[...]
    b = b_ref[...]
    for bi in range(b_tile):                      # static unroll; one MXU matmul per batch
        xb = x_ref[bi]                            # (Cin, TP)
        # 1x1 ConvTranspose2d == per-pixel channel matmul + bias (f32 accumulation).
        r1 = jnp.dot(w, xb, preferred_element_type=jnp.float32) + b      # (Cout, TP)
        # r4 = where(r1 > 0, r1, r1 * -97) ; hardtanh(-96, 96)
        r4 = jnp.where(r1 > 0.0, r1, r1 * -97.0)
        h = jnp.clip(r4, -96.0, 96.0)
        # GLU along channels: split the fused accumulator on a sublane-group boundary.
        a = h[:c_half]
        g = h[c_half:]
        # hardtanh(-39, 39)
        y = jnp.clip(a * jax.nn.sigmoid(g), -39.0, 39.0)
        o_ref[bi] = y.astype(o_ref.dtype)


def model_forward(x_nchw, w_convt, bias, *, matmul_dtype=None):
    """x_nchw: (N, Cin, H, W); w_convt: (Cin, Cout, 1, 1) PyTorch ConvTranspose2d layout;
    bias: (Cout,).  Returns (N, Cout//2, H, W + 3).

    matmul_dtype=jnp.bfloat16 enables the native bf16 MXU path (f32 accumulation kept);
    None keeps full-f32 matmul inputs (exact module semantics)."""
    N, Cin, H, W = x_nchw.shape
    Cin_w, Cout, kh, kw = w_convt.shape
    assert (kh, kw) == (1, 1) and Cin_w == Cin
    assert Cout % 2 == 0, "GLU needs an even channel count"
    c_half = Cout // 2
    assert c_half % 8 == 0, "c_half must be sublane-aligned for the free GLU split"
    HW = H * W

    x_dtype = matmul_dtype if matmul_dtype is not None else x_nchw.dtype
    x_bytes = jnp.dtype(x_dtype).itemsize

    # Batch tile: unroll a few batches per grid step to amortize per-step overhead.
    b_tile = _largest_divisor_le(N, 8)

    # Pixel tiling: lane-dense (multiple of 128, >=512-wide tiles when split), sized so
    # double-buffered in+out blocks stay well under v7x's 64 MiB VMEM (32 MiB scoped).
    HW_pad = _round_up(HW, 128)
    budget = 20 * 1024 * 1024

    def blk_bytes(tp):
        return 2 * b_tile * tp * (Cin * x_bytes + c_half * 4)

    if blk_bytes(HW_pad) <= budget:
        tp = HW_pad
    else:
        tp = 512
        while (tp * 2) <= HW_pad and blk_bytes(tp * 2) <= budget:
            tp *= 2
        HW_pad = _round_up(HW_pad, tp)

    # Pixels stay on the lane axis: NCHW -> (N, Cin, H*W) is a contiguous reshape.
    x3d = x_nchw.reshape(N, Cin, HW)
    if HW_pad != HW:
        x3d = jnp.pad(x3d, ((0, 0), (0, 0), (0, HW_pad - HW)))

    # Fused weight (Cout, Cin) and single fused bias (Cout, 1).
    wt = jnp.transpose(w_convt[:, :, 0, 0])          # (Cout, Cin)
    bvec = bias.reshape(Cout, 1).astype(jnp.float32)

    # bf16 fast path: cast in the wrapper (halves x's HBM->VMEM DMA bytes).
    if matmul_dtype is not None:
        x3d = x3d.astype(matmul_dtype)
        wt = wt.astype(matmul_dtype)

    grid = (N // b_tile, HW_pad // tp)

    out3d = pl.pallas_call(
        functools.partial(fused_kernel, c_half=c_half, b_tile=b_tile),
        out_shape=jax.ShapeDtypeStruct((N, c_half, HW_pad), x_nchw.dtype),
        grid_spec=pltpu.PrefetchScalarGridSpec(
            num_scalar_prefetch=0,
            grid=grid,
            in_specs=[
                pl.BlockSpec((b_tile, Cin, tp), lambda n, p: (n, 0, p)),
                pl.BlockSpec((Cout, Cin), lambda n, p: (0, 0)),   # constant block: no re-DMA
                pl.BlockSpec((Cout, 1), lambda n, p: (0, 0)),
            ],
            out_specs=pl.BlockSpec((b_tile, c_half, tp), lambda n, p: (n, 0, p)),
        ),
        compiler_params=pltpu.CompilerParams(
            dimension_semantics=("parallel", "parallel"),
            vmem_limit_bytes=32 * 1024 * 1024,       # blocks budgeted to ~20 MiB -> safe on v5e/v6e/v7x
        ),
    )(x3d, wt, bvec)

    # Strip the lane pad, restore (H, W); final width pad (1, 2) as a small XLA copy.
    y = out3d[:, :, :HW].reshape(N, c_half, H, W)
    return jnp.pad(y, ((0, 0), (0, 0), (0, 0), (1, 2)))


def reference_forward(x_nchw, w_convt, bias):
    """Plain-JAX reference of the same semantics, for a sanity check."""
    Cout = w_convt.shape[1]
    c_half = Cout // 2
    r1 = jnp.einsum("nchw,co->nohw", x_nchw, w_convt[:, :, 0, 0]) + bias[None, :, None, None]
    r4 = jnp.where(r1 > 0.0, r1, r1 * -97.0)
    h = jnp.clip(r4, -96.0, 96.0)
    y = h[:, :c_half] * jax.nn.sigmoid(h[:, c_half:])
    y = jnp.clip(y, -39.0, 39.0)
    return jnp.pad(y, ((0, 0), (0, 0), (0, 0), (1, 2)))


if __name__ == "__main__":
    # Small shapes consistent with the module (NCHW, 64 input channels, 1x1 conv-transpose).
    # H*W = 104 -> exercises the lane-pad (->128) + strip path.
    N, Cin, H, W = 2, 64, 8, 13
    Cout = 32   # even (original 205 is odd -> GLU undefined; see header note)

    key = jax.random.PRNGKey(0)
    kx, kw, kb = jax.random.split(key, 3)
    x = jax.random.normal(kx, (N, Cin, H, W), dtype=jnp.float32)
    # deterministic "ConvTranspose2d"-style init (uniform in +/- 1/sqrt(Cin))
    bound = 1.0 / (Cin ** 0.5)
    w = jax.random.uniform(kw, (Cin, Cout, 1, 1), dtype=jnp.float32,
                           minval=-bound, maxval=bound)
    b = jax.random.uniform(kb, (Cout,), dtype=jnp.float32,
                           minval=-bound, maxval=bound)

    # f32 path: exact module semantics, checked tightly against the JAX reference.
    out = jax.block_until_ready(model_forward(x, w, b))
    ref = reference_forward(x, w, b)
    assert out.shape == (N, Cout // 2, H, W + 3), out.shape
    assert jnp.allclose(out, ref, atol=2e-5, rtol=2e-5), float(jnp.max(jnp.abs(out - ref)))

    # bf16 MXU fast path (native on v5e/v6e/v7x): compile/shape/finiteness sanity only.
    # The `* -97` branch near r1 == 0 amplifies bf16 rounding, so a tight element-wise
    # comparison against the f32 reference is ill-conditioned.
    out_bf16 = jax.block_until_ready(model_forward(x, w, b, matmul_dtype=jnp.bfloat16))
    assert out_bf16.shape == out.shape
    assert bool(jnp.all(jnp.isfinite(out_bf16)))

    print("KERNEL_OK")
</pallas_src>

<mosaic_0001>
module attributes {stable_mosaic.version = 11 : i64} {
  func.func @fused_kernel(%arg0: i32, %arg1: i32, %arg2: memref<2x64x128xf32, #tpu.memory_space<vmem>>, %arg3: memref<32x64xf32, #tpu.memory_space<vmem>>, %arg4: memref<32x1xf32, #tpu.memory_space<vmem>>, %arg5: memref<2x16x128xf32, #tpu.memory_space<vmem>>) attributes {dimension_semantics = [#tpu.dimension_semantics<parallel>, #tpu.dimension_semantics<parallel>], iteration_bounds = array<i64: 1, 1>, scalar_prefetch = 0 : i64, scratch_operands = 0 : i64, tpu.core_type = #tpu.core_type<tc>, window_params = [{transform_indices = @transform_0, window_bounds = array<i64: 2, 64, 128>}, {pipeline_mode = #tpu.pipeline_mode<synchronous>, transform_indices = @transform_1, window_bounds = array<i64: 32, 64>}, {pipeline_mode = #tpu.pipeline_mode<synchronous>, transform_indices = @transform_2, window_bounds = array<i64: 32, 1>}, {transform_indices = @transform_3, window_bounds = array<i64: 2, 16, 128>}]} {
    %c0 = arith.constant 0 : index
    %c0_0 = arith.constant 0 : index
    %0 = vector.load %arg3[%c0, %c0_0] : memref<32x64xf32, #tpu.memory_space<vmem>>, vector<32x64xf32>
    %c0_1 = arith.constant 0 : index
    %c0_2 = arith.constant 0 : index
    %1 = vector.load %arg4[%c0_1, %c0_2] : memref<32x1xf32, #tpu.memory_space<vmem>>, vector<32x1xf32>
    %c0_3 = arith.constant 0 : index
    %c0_4 = arith.constant 0 : index
    %c0_5 = arith.constant 0 : index
    %2 = vector.load %arg2[%c0_3, %c0_4, %c0_5] : memref<2x64x128xf32, #tpu.memory_space<vmem>>, vector<1x64x128xf32>
    %3 = vector.shape_cast %2 : vector<1x64x128xf32> to vector<64x128xf32>
    %cst = arith.constant dense<0.000000e+00> : vector<32x128xf32>
    %4 = tpu.matmul %0, %3, %cst {dimension_numbers = #tpu.dot_dimension_numbers<[1], [0], [0], [1], [0, 0, 1, 1], [], []>} : vector<32x64xf32>, vector<64x128xf32>, vector<32x128xf32> -> vector<32x128xf32>
    %5 = vector.broadcast %1 : vector<32x1xf32> to vector<32x128xf32>
    %6 = arith.addf %4, %5 : vector<32x128xf32>
    %cst_6 = arith.constant 0.000000e+00 : f32
    %7 = vector.broadcast %cst_6 : f32 to vector<32x128xf32>
    %8 = arith.cmpf ogt, %6, %7 : vector<32x128xf32>
    %cst_7 = arith.constant -9.700000e+01 : f32
    %9 = vector.broadcast %cst_7 : f32 to vector<32x128xf32>
    %10 = arith.mulf %6, %9 : vector<32x128xf32>
    %11 = arith.select %8, %6, %10 : vector<32x128xi1>, vector<32x128xf32>
    %cst_8 = arith.constant -9.600000e+01 : f32
    %cst_9 = arith.constant 9.600000e+01 : f32
    %12 = vector.broadcast %cst_8 : f32 to vector<32x128xf32>
    %13 = arith.maximumf %12, %11 : vector<32x128xf32>
    %14 = vector.broadcast %cst_9 : f32 to vector<32x128xf32>
    %15 = arith.minimumf %14, %13 : vector<32x128xf32>
    %16 = vector.extract_strided_slice %15 {offsets = [0, 0], sizes = [16, 128], strides = [1, 1]} : vector<32x128xf32> to vector<16x128xf32>
    %17 = vector.extract_strided_slice %15 {offsets = [16, 0], sizes = [16, 128], strides = [1, 1]} : vector<32x128xf32> to vector<16x128xf32>
    %18 = arith.negf %17 : vector<16x128xf32>
    %19 = math.exp %18 : vector<16x128xf32>
    %cst_10 = arith.constant 1.000000e+00 : f32
    %20 = vector.broadcast %cst_10 : f32 to vector<16x128xf32>
    %21 = arith.addf %20, %19 : vector<16x128xf32>
    %22 = arith.divf %20, %21 : vector<16x128xf32>
    %23 = arith.mulf %16, %22 : vector<16x128xf32>
    %cst_11 = arith.constant -3.900000e+01 : f32
    %cst_12 = arith.constant 3.900000e+01 : f32
    %24 = vector.broadcast %cst_11 : f32 to vector<16x128xf32>
    %25 = arith.maximumf %24, %23 : vector<16x128xf32>
    %26 = vector.broadcast %cst_12 : f32 to vector<16x128xf32>
    %27 = arith.minimumf %26, %25 : vector<16x128xf32>
    %c0_13 = arith.constant 0 : index
    %c0_14 = arith.constant 0 : index
    %c0_15 = arith.constant 0 : index
    %28 = vector.load %arg5[%c0_13, %c0_14, %c0_15] : memref<2x16x128xf32, #tpu.memory_space<vmem>>, vector<1x16x128xf32>
    %29 = vector.shape_cast %28 : vector<1x16x128xf32> to vector<16x128xf32>
    %30 = vector.shape_cast %27 : vector<16x128xf32> to vector<1x16x128xf32>
    tpu.vector_store %arg5[%c0_13, %c0_14, %c0_15], %30 {strides = array<i32>} : memref<2x16x128xf32, #tpu.memory_space<vmem>>, vector<1x16x128xf32>,
    %c1 = arith.constant 1 : index
    %c0_16 = arith.constant 0 : index
    %c0_17 = arith.constant 0 : index
    %31 = vector.load %arg2[%c1, %c0_16, %c0_17] : memref<2x64x128xf32, #tpu.memory_space<vmem>>, vector<1x64x128xf32>
    %32 = vector.shape_cast %31 : vector<1x64x128xf32> to vector<64x128xf32>
    %cst_18 = arith.constant dense<0.000000e+00> : vector<32x128xf32>
    %33 = tpu.matmul %0, %32, %cst_18 {dimension_numbers = #tpu.dot_dimension_numbers<[1], [0], [0], [1], [0, 0, 1, 1], [], []>} : vector<32x64xf32>, vector<64x128xf32>, vector<32x128xf32> -> vector<32x128xf32>
    %34 = vector.broadcast %1 : vector<32x1xf32> to vector<32x128xf32>
    %35 = arith.addf %33, %34 : vector<32x128xf32>
    %cst_19 = arith.constant 0.000000e+00 : f32
    %36 = vector.broadcast %cst_19 : f32 to vector<32x128xf32>
    %37 = arith.cmpf ogt, %35, %36 : vector<32x128xf32>
    %cst_20 = arith.constant -9.700000e+01 : f32
    %38 = vector.broadcast %cst_20 : f32 to vector<32x128xf32>
    %39 = arith.mulf %35, %38 : vector<32x128xf32>
    %40 = arith.select %37, %35, %39 : vector<32x128xi1>, vector<32x128xf32>
    %cst_21 = arith.constant -9.600000e+01 : f32
    %cst_22 = arith.constant 9.600000e+01 : f32
    %41 = vector.broadcast %cst_21 : f32 to vector<32x128xf32>
    %42 = arith.maximumf %41, %40 : vector<32x128xf32>
    %43 = vector.broadcast %cst_22 : f32 to vector<32x128xf32>
    %44 = arith.minimumf %43, %42 : vector<32x128xf32>
    %45 = vector.extract_strided_slice %44 {offsets = [0, 0], sizes = [16, 128], strides = [1, 1]} : vector<32x128xf32> to vector<16x128xf32>
    %46 = vector.extract_strided_slice %44 {offsets = [16, 0], sizes = [16, 128], strides = [1, 1]} : vector<32x128xf32> to vector<16x128xf32>
    %47 = arith.negf %46 : vector<16x128xf32>
    %48 = math.exp %47 : vector<16x128xf32>
    %cst_23 = arith.constant 1.000000e+00 : f32
    %49 = vector.broadcast %cst_23 : f32 to vector<16x128xf32>
    %50 = arith.addf %49, %48 : vector<16x128xf32>
    %51 = arith.divf %49, %50 : vector<16x128xf32>
    %52 = arith.mulf %45, %51 : vector<16x128xf32>
    %cst_24 = arith.constant -3.900000e+01 : f32
    %cst_25 = arith.constant 3.900000e+01 : f32
    %53 = vector.broadcast %cst_24 : f32 to vector<16x128xf32>
    %54 = arith.maximumf %53, %52 : vector<16x128xf32>
    %55 = vector.broadcast %cst_25 : f32 to vector<16x128xf32>
    %56 = arith.minimumf %55, %54 : vector<16x128xf32>
    %c1_26 = arith.constant 1 : index
    %c0_27 = arith.constant 0 : index
    %c0_28 = arith.constant 0 : index
    %57 = vector.load %arg5[%c1_26, %c0_27, %c0_28] : memref<2x16x128xf32, #tpu.memory_space<vmem>>, vector<1x16x128xf32>
    %58 = vector.shape_cast %57 : vector<1x16x128xf32> to vector<16x128xf32>
    %59 = vector.shape_cast %56 : vector<16x128xf32> to vector<1x16x128xf32>
    tpu.vector_store %arg5[%c1_26, %c0_27, %c0_28], %59 {strides = array<i32>} : memref<2x16x128xf32, #tpu.memory_space<vmem>>, vector<1x16x128xf32>,
    return
  }
  func.func @transform_0(%arg0: i32, %arg1: i32) -> (i32, i32, i32) {
    %c0_i32 = arith.constant 0 : i32
    %c0_i32_0 = arith.constant 0 : i32
    return %arg0, %c0_i32, %arg1 : i32, i32, i32
  }
  func.func @transform_1(%arg0: i32, %arg1: i32) -> (i32, i32) {
    %c0_i32 = arith.constant 0 : i32
    %c0_i32_0 = arith.constant 0 : i32
    %c0_i32_1 = arith.constant 0 : i32
    return %c0_i32, %c0_i32_0 : i32, i32
  }
  func.func @transform_2(%arg0: i32, %arg1: i32) -> (i32, i32) {
    %c0_i32 = arith.constant 0 : i32
    %c0_i32_0 = arith.constant 0 : i32
    %c0_i32_1 = arith.constant 0 : i32
    return %c0_i32, %c0_i32_0 : i32, i32
  }
  func.func @transform_3(%arg0: i32, %arg1: i32) -> (i32, i32, i32) {
    %c0_i32 = arith.constant 0 : i32
    %c0_i32_0 = arith.constant 0 : i32
    return %arg0, %c0_i32, %arg1 : i32, i32, i32
  }
}

</mosaic_0001>

<bundles_post_ra>
// kernel: tpu_custom_call.1
= control target key start
LH: loop header
LB: loop body
LE: loop exit
PB: predicated region body
PF: predicated region fallthrough
CT: control target
= control target key end

     0   :  { %8 = vsyncpa [#allocation3], 0  ;;  %s498_s0 = inlined_call_operand.hbm [shape: f32[2,64,128], index: 0, kind: input, shape index: {}]   ;;  %s499_s1 = inlined_call_operand.vmem [shape: f32[32,64], index: 1, kind: input, shape index: {}]   ;;  %s500_s2 = inlined_call_operand.vmem [shape: f32[32,1], index: 2, kind: input, shape index: {}]   ;;  %s501_s3 = inlined_call_operand.hbm [shape: f32[2,16,128], index: 3, kind: output, shape index: {}]  }
   0x1   :  { %9 = vsyncpa [#allocation4], 0  ;;  %s14_s14 = sshll.u32 %s498_s0, 4  ;;  %s414_s15 = smov [#allocation2]   ;;  %s15_s14 = int_to_ptr.hbm [resolvable:$true] %s14_s14 }
   0x2   :  { %s16_s16 = sshll.u32 %s414_s15, 4  ;;  %s415_s17 = smov 128   ;;  %s17_s16 = int_to_ptr.vmem [resolvable:$true] %s16_s16 }
   0x3   :  { %s416_s18 = smov 8  }
   0x4   :  { %22 = dma.hbm_to_vmem [thread:$0]  %s15_s14, 2048, %s17_s16, [#allocation3], %s415_s17, %s415_s17, %s416_s18  }
   0x5   :  { %410 = dma.done.wait [#allocation3], 2048  }
   0x6   :  { %411 = vsyncadd [#allocation3], 4294965248  ;;  %v417_v0 = vmov 0   ;;  %v46_v1 = vld [vmem:[#allocation2 + $0x38] sm:$0xff]  ;;  %v45_v3 = vld [vmem:[#allocation2 + $0x30] sm:$0xff]  ;;  %vm67_vm0 = vcmask 523264  }
   0x7   :  { %344 = vset.pattern.permute.xlu0 %v417_v0  ;;  %345 = vset.pattern.permute.xlu1 %v417_v0  ;;  %v183_v2 = vld [vmem:[#allocation2 + $0x78] sm:$0xff]  ;;  %v182_v4 = vld [vmem:[#allocation2 + $0x70] sm:$0xff]  ;;  %v44_v5 = vld [vmem:[#allocation2 + $0x28] sm:$0xff]  ;;  %s286_s9 = sshll.u32 %s501_s3, 4  ;;  %s287_s9 = int_to_ptr.hbm [resolvable:$true] %s286_s9 }
   0x8   :  { %323 = vmatpush.msra.mxu2 %v46_v1  ;;  %331 = vmatpush.msra.mxu3 %v183_v2  ;;  %v181_v6 = vld [vmem:[#allocation2 + $0x68] sm:$0xff]  ;;  %v43_v7 = vld [vmem:[#allocation2 + $0x20] sm:$0xff]  ;;  %v42_v9 = vld [vmem:[#allocation2 + $0x18] sm:$0xff] }
   0x9   :  { %88 = vmatpush.msra.mxu0 %v46_v1  ;;  %192 = vmatpush.msra.mxu1 %v183_v2  ;;  %v180_v8 = vld [vmem:[#allocation2 + $0x60] sm:$0xff]  ;;  %v179_v10 = vld [vmem:[#allocation2 + $0x58] sm:$0xff]  ;;  %v37_v11 = vld [vmem:[%s500_s2 + $0x10] sm:$0xff] }
   0xa   :  { %324 = vmatpush.msra.mxu2 %v45_v3  ;;  %332 = vmatpush.msra.mxu3 %v182_v4  ;;  %v41_v12 = vld [vmem:[#allocation2 + $0x10] sm:$0xff]  ;;  %v40_v14 = vld [vmem:[#allocation2 + $0x8] sm:$0xff]  ;;  %v39_v16 = vld [vmem:[#allocation2] sm:$0xff] }
   0xb   :  { %89 = vmatpush.msra.mxu0 %v45_v3  ;;  %193 = vmatpush.msra.mxu1 %v182_v4  ;;  %v178_v13 = vld [vmem:[#allocation2 + $0x50] sm:$0xff]  ;;  %v177_v15 = vld [vmem:[#allocation2 + $0x48] sm:$0xff]  ;;  %v176_v17 = vld [vmem:[#allocation2 + $0x40] sm:$0xff] }
   0xc   :  { %325 = vmatpush.msra.mxu2 %v44_v5  ;;  %333 = vmatpush.msra.mxu3 %v181_v6  ;;  %v33_v18 = vld [vmem:[%s499_s1 + $0x10] sm:$0xff]  ;;  %v38_v19 = vld [vmem:[%s500_s2 + $0x18] sm:$0xff]  ;;  %v35_v20 = vld [vmem:[%s500_s2] sm:$0xff] }
   0xd   :  { %90 = vmatpush.msra.mxu0 %v44_v5  ;;  %194 = vmatpush.msra.mxu1 %v181_v6  ;;  %v31_v21 = vld [vmem:[%s499_s1] sm:$0xff]  ;;  %v34_v22 = vld [vmem:[%s499_s1 + $0x18] sm:$0xff]  ;;  %v36_v23 = vld [vmem:[%s500_s2 + $0x8] sm:$0xff] }
   0xe   :  { %326 = vmatpush.msra.mxu2 %v43_v7  ;;  %334 = vmatpush.msra.mxu3 %v180_v8  ;;  %v32_v24 = vld [vmem:[%s499_s1 + $0x8] sm:$0xff]  ;;  %s418_s1 = smov [#allocation5]  }
   0xf   :  { %59 = vperm.xlu0 %344, %v37_v11   ;;  %91 = vmatpush.msra.mxu0 %v43_v7  ;;  %s284_s2 = sshll.u32 %s418_s1, 4  ;;  %s285_s2 = int_to_ptr.vmem [resolvable:$true] %s284_s2 }
  0x10   :  { %327 = vmatpush.msra.mxu2 %v42_v9  ;;  %335 = vmatpush.msra.mxu3 %v179_v10 }
  0x11   :  { %195 = vmatpush.msra.mxu1 %v180_v8  ;;  %92 = vmatpush.msra.mxu0 %v42_v9 }
  0x12   :  { %328 = vmatpush.msra.mxu2 %v41_v12  ;;  %336 = vmatpush.msra.mxu3 %v178_v13 }
  0x13   :  { %196 = vmatpush.msra.mxu1 %v179_v10  ;;  %93 = vmatpush.msra.mxu0 %v41_v12 }
  0x14   :  { %329 = vmatpush.msra.mxu2 %v40_v14  ;;  %337 = vmatpush.msra.mxu3 %v177_v15 }
  0x15   :  { %197 = vmatpush.msra.mxu1 %v178_v13  ;;  %94 = vmatpush.msra.mxu0 %v40_v14 }
  0x16   :  { %330 = vmatpush.msra.mxu2 %v39_v16  ;;  %338 = vmatpush.msra.mxu3 %v176_v17 }
  0x17   :  { %301 = vmatmul.msk.f32.vlgmr.msra.gmra.mxu2 %vm67_vm0, %v33_v18  ;;  %313 = vmatmul.msk.f32.vlgmr.msra.gmra.mxu3 %vm67_vm0, %v33_v18 }
  0x18   :  { %64 = vperm.xlu0 %344, %v38_v19   ;;  %198 = vmatpush.msra.mxu1 %v177_v15 }
  0x19   :  { %95 = vmatpush.msra.mxu0 %v39_v16  ;;  %49 = vperm.xlu1 %345, %v35_v20  }
  0x1a   :  { %199 = vmatpush.msra.mxu1 %v176_v17  ;;  %299 = vmatmul.msk.f32.vlgmr.msra.gmra.mxu0 %vm67_vm0, %v31_v21 }
  0x1b   :  { %311 = vmatmul.msk.f32.vlgmr.msra.gmra.mxu1 %vm67_vm0, %v31_v21 }
  0x1f   :  { %302 = vmatmul.msk.f32.gmra.mxu2 %vm67_vm0, %v34_v22  ;;  %314 = vmatmul.msk.f32.gmra.mxu3 %vm67_vm0, %v34_v22 }
  0x21   :  { %54 = vperm.xlu1 %345, %v36_v23  }
  0x22   :  { %300 = vmatmul.msk.f32.gmra.mxu0 %vm67_vm0, %v32_v24 }
  0x23   :  { %312 = vmatmul.msk.f32.gmra.mxu1 %vm67_vm0, %v32_v24 }
  0x81   :  { %v60_v25 = vpop.permute.xlu0 %59 }
  0x8a   :  { %v65_v36 = vpop.permute.xlu0 %64 }
  0x8b   :  { %v50_v55 = vpop.permute.xlu1 %49 }
  0x93   :  { %v55_v8 = vpop.permute.xlu1 %54 }
  0x97   :  { %v97_v56 = vpop.f32.mrf.mxu0 }
  0x98   :  { %v98_v57 = vadd.f32 %v97_v56, %v50_v55  ;;  %v201_v58 = vpop.f32.mrf.mxu1 }
  0x99   :  { %v202_v59 = vadd.f32 %v201_v58, %v50_v55 }
  0x9a   :  { %v103_v26 = vpop.f32.mrf.mxu2  ;;  %v207_v27 = vpop.f32.mrf.mxu3  ;;  %v113_v61 = vmul.f32 -97.0, %v98_v57  ;;  %vm109_vm5 = vcmp.gt.f32.partialorder %v98_v57, 0.0 }
  0x9b   :  { %v104_v28 = vadd.f32 %v103_v26, %v60_v25  ;;  %v208_v29 = vadd.f32 %v207_v27, %v60_v25  ;;  %v217_v0 = vmul.f32 -97.0, %v202_v59  ;;  %vm213_vm6 = vcmp.gt.f32.partialorder %v202_v59, 0.0 }
  0x9c   :  { %v117_v6 = vsel %vm109_vm5, %v98_v57, %v113_v61 }
  0x9d   :  { %vm111_vm1 = vcmp.gt.f32.partialorder %v104_v28, 0.0  ;;  %v115_v30 = vmul.f32 -97.0, %v104_v28  ;;  %vm215_vm2 = vcmp.gt.f32.partialorder %v208_v29, 0.0  ;;  %v219_v31 = vmul.f32 -97.0, %v208_v29 }
  0x9e   :  { %v221_v12 = vsel %vm213_vm6, %v202_v59, %v217_v0  ;;  %v303_v20 = vclamps-f32 %v117_v6, 96.0 }
  0x9f   :  { %v119_v32 = vsel %vm111_vm1, %v104_v28, %v115_v30  ;;  %v223_v33 = vsel %vm215_vm2, %v208_v29, %v219_v31  ;;  %v100_v9 = vpop.f32.mrf.mxu0  ;;  %v315_v22 = vclamps-f32 %v221_v12, 96.0 }
  0xa0   :  { %v305_v34 = vclamps-f32 %v119_v32, 96.0  ;;  %v317_v35 = vclamps-f32 %v223_v33, 96.0  ;;  %v204_v16 = vpop.f32.mrf.mxu1  ;;  %v101_v19 = vadd.f32 %v100_v9, %v55_v8 }
  0xa1   :  { %v205_v26 = vadd.f32 %v204_v16, %v55_v8 }
  0xa2   :  { %v307_v37 = vmul.f32 -1.442695, %v305_v34  ;;  %v319_v38 = vmul.f32 -1.442695, %v317_v35  ;;  %v106_v39 = vpop.f32.mrf.mxu2  ;;  %v210_v40 = vpop.f32.mrf.mxu3  ;;  %v114_v32 = vmul.f32 -97.0, %v101_v19  ;;  %vm110_vm15 = vcmp.gt.f32.partialorder %v101_v19, 0.0 }
  0xa3   :  { %v107_v41 = vadd.f32 %v106_v39, %v65_v36  ;;  %v211_v42 = vadd.f32 %v210_v40, %v65_v36  ;;  %v218_v39 = vmul.f32 -97.0, %v205_v26  ;;  %vm214_vm1 = vcmp.gt.f32.partialorder %v205_v26, 0.0 }
  0xa4   :  { %346 = vpow2.f32 %v307_v37 }
  0xa5   :  { %348 = vpow2.f32 %v319_v38  ;;  %vm112_vm3 = vcmp.gt.f32.partialorder %v107_v41, 0.0  ;;  %v116_v43 = vmul.f32 -97.0, %v107_v41  ;;  %vm216_vm4 = vcmp.gt.f32.partialorder %v211_v42, 0.0 }
  0xa6   :  { %v220_v44 = vmul.f32 -97.0, %v211_v42 }
  0xa7   :  { %v120_v45 = vsel %vm112_vm3, %v107_v41, %v116_v43 }
  0xa8   :  { %v306_v46 = vclamps-f32 %v120_v45, 96.0  ;;  %v224_v47 = vsel %vm216_vm4, %v211_v42, %v220_v44  ;;  %v118_v45 = vsel %vm110_vm15, %v101_v19, %v114_v32 }
  0xa9   :  { %v318_v48 = vclamps-f32 %v224_v47, 96.0 }
  0xaa   :  { %v347_v49 = vpop.eup %346  ;;  %v308_v50 = vmul.f32 -1.442695, %v306_v46 }
  0xab   :  { %v349_v51 = vpop.eup %348  ;;  %v135_v52 = vadd.f32 1.0, %v347_v49  ;;  %v320_v53 = vmul.f32 -1.442695, %v318_v48 }
  0xac   :  { %v239_v54 = vadd.f32 1.0, %v349_v51  ;;  %350 = vpow2.f32 %v308_v50 }
  0xad   :  { %352 = vrcp.f32 %v135_v52  ;;  %v146_v10 = vand.u32 2147483647, %v135_v52  ;;  %v148_v11 = vand.u32 2147483648, %v135_v52  ;;  %vm142_vm9 = vweird.f32 %v135_v52 }
  0xae   :  { %354 = vrcp.f32 %v239_v54  ;;  %v252_v15 = vand.u32 2147483648, %v239_v54  ;;  %v250_v18 = vand.u32 2147483647, %v239_v54  ;;  %vm246_vm11 = vweird.f32 %v239_v54 }
  0xaf   :  { %356 = vpow2.f32 %v320_v53  ;;  %v149_v24 = vor.u32 1.1754944e-38, %v148_v11  ;;  %vm147_vm12 = vcmp.eq.f32.partialorder %v146_v10, 8.507059e+37 }
  0xb0   :  { %v253_v28 = vor.u32 1.1754944e-38, %v252_v15  ;;  %vm251_vm14 = vcmp.eq.f32.partialorder %v250_v18, 8.507059e+37 }
  0xb2   :  { %v351_v60 = vpop.eup %350 }
  0xb3   :  { %v353_v62 = vpop.eup %352  ;;  %v477_v63 = vadd.f32 1.0, %v351_v60 }
  0xb4   :  { %v355_v1 = vpop.eup %354  ;;  %v138_v2 = vmul.f32 %v353_v62, %v135_v52  ;;  %vm143_vm7 = vweird.f32 %v353_v62  ;;  %v304_v52 = vclamps-f32 %v118_v45, 96.0 }
  0xb5   :  { %v357_v3 = vpop.eup %356  ;;  %358 = vrcp.f32 %v477_v63  ;;  %v242_v4 = vmul.f32 %v355_v1, %v239_v54  ;;  %vm247_vm8 = vweird.f32 %v355_v1  ;;  %vm144_vm10 = vmor %vm142_vm9, %vm143_vm7  ;;  %v163_v38 = vand.u32 2147483648, %v477_v63 }
  0xb6   :  { %v480_v5 = vadd.f32 1.0, %v357_v3  ;;  %v139_v7 = vsub.f32 1.0, %v138_v2  ;;  %vm248_vm13 = vmor %vm246_vm11, %vm247_vm8  ;;  %v161_v43 = vand.u32 2147483647, %v477_v63  ;;  %vm157_vm2 = vweird.f32 %v477_v63 }
  0xb7   :  { %v243_v13 = vsub.f32 1.0, %v242_v4  ;;  %v164_v49 = vor.u32 1.1754944e-38, %v163_v38  ;;  %v222_v54 = vsel %vm214_vm1, %v205_v26, %v218_v39 }
  0xb8   :  { %360 = vrcp.f32 %v480_v5  ;;  %v140_v14 = vmul.f32 %v353_v62, %v139_v7  ;;  %v267_v48 = vand.u32 2147483648, %v480_v5  ;;  %v265_v51 = vand.u32 2147483647, %v480_v5 }
  0xb9   :  { %v244_v17 = vmul.f32 %v355_v1, %v243_v13  ;;  %vm162_vm5 = vcmp.eq.f32.partialorder %v161_v43, 8.507059e+37  ;;  %vm261_vm6 = vweird.f32 %v480_v5  ;;  %v316_v59 = vclamps-f32 %v222_v54, 96.0 }
  0xba   :  { %v141_v21 = vadd.f32 %v353_v62, %v140_v14  ;;  %v268_v58 = vor.u32 1.1754944e-38, %v267_v48  ;;  %vm266_vm8 = vcmp.eq.f32.partialorder %v265_v51, 8.507059e+37 }
  0xbb   :  { %v359_v23 = vpop.eup %358  ;;  %v245_v25 = vadd.f32 %v355_v1, %v244_v17 }
  0xbc   :  { %v145_v27 = vsel %vm144_vm10, %v353_v62, %v141_v21  ;;  %v153_v29 = vmul.f32 %v359_v23, %v477_v63  ;;  %vm158_vm0 = vweird.f32 %v359_v23 }
  0xbd   :  { %v150_v30 = vsel %vm147_vm12, %v149_v24, %v145_v27  ;;  %v249_v31 = vsel %vm248_vm13, %v355_v1, %v245_v25  ;;  %vm159_vm3 = vmor %vm157_vm2, %vm158_vm0 }
  0xbe   :  { %v361_v33 = vpop.eup %360  ;;  %v167_v34 = vmul.f32 %v303_v20, %v150_v30  ;;  %v254_v35 = vsel %vm251_vm14, %v253_v28, %v249_v31  ;;  %v154_v36 = vsub.f32 1.0, %v153_v29 }
  0xbf   :  { %v271_v37 = vmul.f32 %v315_v22, %v254_v35  ;;  %v257_v40 = vmul.f32 %v361_v33, %v480_v5  ;;  %vm262_vm4 = vweird.f32 %v361_v33 }
  0xc0   :  { %v309_v41 = vclamps-f32 %v167_v34, 39.0  ;;  %v155_v42 = vmul.f32 %v359_v23, %v154_v36  ;;  %vm263_vm7 = vmor %vm261_vm6, %vm262_vm4 }
  0xc1   :  { %v321_v44 = vclamps-f32 %v271_v37, 39.0  ;;  %v258_v46 = vsub.f32 1.0, %v257_v40 }
  0xc2   :  { %173 = vst [vmem:[#allocation5] sm:$0xff] %v309_v41  ;;  %v156_v47 = vadd.f32 %v359_v23, %v155_v42 }
  0xc3   :  { %278 = vst [vmem:[#allocation5 + $0x10] sm:$0xff] %v321_v44  ;;  %v259_v50 = vmul.f32 %v361_v33, %v258_v46 }
  0xc4   :  { %v160_v53 = vsel %vm159_vm3, %v359_v23, %v156_v47 }
  0xc5   :  { %v165_v55 = vsel %vm162_vm5, %v164_v49, %v160_v53  ;;  %v260_v56 = vadd.f32 %v361_v33, %v259_v50 }
  0xc6   :  { %v168_v57 = vmul.f32 %v304_v52, %v165_v55 }
  0xc7   :  { %v264_v60 = vsel %vm263_vm7, %v361_v33, %v260_v56 }
  0xc8   :  { %v310_v61 = vclamps-f32 %v168_v57, 39.0  ;;  %v269_v62 = vsel %vm266_vm8, %v268_v58, %v264_v60 }
  0xc9   :  { %v272_v63 = vmul.f32 %v316_v59, %v269_v62 }
  0xca   :  { %174 = vst [vmem:[#allocation5 + $0x8] sm:$0xff] %v310_v61 }
  0xcb   :  { %v322_v0 = vclamps-f32 %v272_v63, 39.0 }
  0xcd   :  { %279 = vst [vmem:[#allocation5 + $0x18] sm:$0xff] %v322_v0 }
  0xce   :  { %292 = dma.vmem_to_hbm [thread:$0]  %s285_s2, 512, %s287_s9, [#allocation4], %s415_s17, %s415_s17, %s416_s18  }
  0xcf   :  { %412 = dma.done.wait [#allocation4], 512  }
  0xd0   :  { %413 = vsyncadd [#allocation4], 4294966784 }
  0xd1   :  { %297 = vsyncpa [#allocation3], 1 }
  0xd2   :  { %298 = vsyncpa [#allocation4], 1 }

</bundles_post_ra>
